<compile_context>
chip_gen: v5e
topology: v5e:2x2
jax: 0.10.0
libtpu: 0.0.40
codegen_flags: <defaults>
</compile_context>

<pallas_src>
import functools

import jax
import jax.numpy as jnp
from jax.experimental import pallas as pl
from jax.experimental.pallas import tpu as pltpu

LANE = 128  # vreg lane width; pad feature dims (and N) to multiples of this.


def _round_up(x, m):
    return pl.cdiv(x, m) * m


def _buffered_once():
    """Single pipeline buffer for grid-constant blocks (graceful fallback to default)."""
    try:
        return pl.Buffered(1)
    except Exception:  # pragma: no cover - fall back to default double-buffering
        return None


_SINGLE_BUF = _buffered_once()


def _vmem_physical_bytes():
    """Physical per-core VMEM; conservative 64 MiB (v7x) if the query is unavailable."""
    try:
        info = pltpu.get_tpu_info()
        cap = getattr(info, "vmem_capacity_bytes", None)
        if cap:
            return int(cap)
    except Exception:  # pragma: no cover
        pass
    return 64 << 20


# ----------------------------------------------------------------------------------------
# Fully fused, VMEM-resident path (small/medium graphs): grid=(n_layers,)
# ----------------------------------------------------------------------------------------
def _fused_sage_kernel(a_ref, dinv_ref, x_ref, w_ref, b_ref, o_ref, h_scratch, *, f_pad):
    """One grid step == one SAGEConv('mean') layer.

    a_ref     : [Np, Np] bf16  0/1 adjacency (VMEM-resident, DMA'd once, single-buffered)
    dinv_ref  : [Np, 1]  f32   1/max(deg,1) per row (applied post-matmul in f32)
    x_ref     : [Np, F]  bf16  padded input features (VMEM-resident, DMA'd once)
    w_ref     : [2F, F]  bf16  this layer's packed [[W_self],[W_neigh]] (zero-padded)
    b_ref     : [1, F]   f32   this layer's bias (zero-padded)
    o_ref     : [Np, F]  f32   padded logits (written only on the last layer)
    h_scratch : [Np, F]  bf16  running node features, resident in VMEM across layers
    """
    layer = pl.program_id(0)
    n_layers = pl.num_programs(0)

    # Layer 0: seed the running features with the input (one cheap VMEM copy).
    @pl.when(layer == 0)
    def _():
        h_scratch[...] = x_ref[...]

    hb = h_scratch[...]                                                   # [Np, F] bf16

    # Mean aggregation: bf16 MXU matmul (f32 accumulate) + f32 per-row 1/deg scale.
    agg = jnp.dot(a_ref[...], hb, preferred_element_type=jnp.float32)    # [Np, F] f32
    agg = agg * dinv_ref[...]

    # Self + neighbor projections as two MXU matmuls against static weight slices
    # (no lane-axis concat / [Np, 2F] temporary).
    out = (jnp.dot(hb, w_ref[:f_pad, :], preferred_element_type=jnp.float32)
           + jnp.dot(agg.astype(jnp.bfloat16), w_ref[f_pad:, :],
                     preferred_element_type=jnp.float32)
           + b_ref[...])

    # Hidden layers: ReLU (+ dropout == identity at inference); H stays in VMEM as bf16.
    @pl.when(layer != n_layers - 1)
    def _():
        h_scratch[...] = jnp.maximum(out, 0.0).astype(h_scratch.dtype)

    # Last layer: write the logits once (lane-dense full-width stores).
    @pl.when(layer == n_layers - 1)
    def _():
        o_ref[...] = out.astype(o_ref.dtype)


def _resident_vmem_bytes(n_pad, f_pad):
    a_bufs = 1 if _SINGLE_BUF is not None else 2
    a_bytes = a_bufs * n_pad * n_pad * 2                 # bf16 adjacency
    dinv_bytes = a_bufs * n_pad * LANE * 4               # (Np,1) f32 pads lanes in VMEM
    x_bytes = a_bufs * n_pad * f_pad * 2                 # bf16 features
    out_bytes = 2 * n_pad * f_pad * 4                    # f32 logits (count 2 bufs, safe)
    h_bytes = n_pad * f_pad * 2                          # bf16 running-H scratch
    w_bytes = 2 * (2 * f_pad * f_pad * 2)                # per-layer W, double-buffered
    b_bytes = 2 * (8 * f_pad * 4)                        # per-layer bias (sublane-padded)
    tmp_bytes = 5 * n_pad * f_pad * 4                    # kernel-internal [Np,F] temporaries
    return a_bytes + dinv_bytes + x_bytes + out_bytes + h_bytes + w_bytes + b_bytes + tmp_bytes


def _sage_resident(a_bin, dinv, x_pad, w_all, b_all, n_pad, f_pad, n_layers, vmem_limit):
    kernel = functools.partial(_fused_sage_kernel, f_pad=f_pad)
    return pl.pallas_call(
        kernel,
        out_shape=jax.ShapeDtypeStruct((n_pad, f_pad), jnp.float32),
        grid_spec=pltpu.PrefetchScalarGridSpec(
            num_scalar_prefetch=0,
            grid=(n_layers,),
            in_specs=[
                # Grid-constant blocks: DMA'd once, single pipeline buffer.
                pl.BlockSpec((n_pad, n_pad), lambda l: (0, 0), pipeline_mode=_SINGLE_BUF),
                pl.BlockSpec((n_pad, 1), lambda l: (0, 0), pipeline_mode=_SINGLE_BUF),
                pl.BlockSpec((n_pad, f_pad), lambda l: (0, 0), pipeline_mode=_SINGLE_BUF),
                # Per-layer weights/bias: default double-buffering so layer l+1 prefetches.
                pl.BlockSpec((None, 2 * f_pad, f_pad), lambda l: (l, 0, 0)),
                pl.BlockSpec((None, 1, f_pad), lambda l: (l, 0, 0)),
            ],
            out_specs=pl.BlockSpec((n_pad, f_pad), lambda l: (0, 0),
                                   pipeline_mode=_SINGLE_BUF),
            scratch_shapes=[pltpu.VMEM((n_pad, f_pad), jnp.bfloat16)],   # running H (bf16)
        ),
        compiler_params=pltpu.CompilerParams(
            # Layers depend on each other through the VMEM scratch -> must be sequential.
            dimension_semantics=("arbitrary",),
            vmem_limit_bytes=int(vmem_limit),
        ),
    )(a_bin, dinv, x_pad, w_all, b_all)


# ----------------------------------------------------------------------------------------
# Row-tiled streaming path (large graphs / v7x): one pallas_call per layer, grid over rows
# ----------------------------------------------------------------------------------------
def _sage_layer_stream_kernel(a_ref, dinv_ref, hrow_ref, hall_ref, w_ref, b_ref, o_ref,
                              *, f_pad, relu):
    """One row tile of one SAGEConv('mean') layer.

    a_ref    : [TM, Np] bf16  streamed adjacency row tile (0/1)
    dinv_ref : [TM, 1]  f32   1/max(deg,1) for these rows
    hrow_ref : [TM, F]  bf16  this tile's own features (self term)
    hall_ref : [Np, F]  bf16  all node features (resident, single-buffered)
    w_ref    : [2F, F]  bf16  packed [[W_self],[W_neigh]]
    b_ref    : [1, F]   f32   bias
    o_ref    : [TM, F]        output rows (bf16 hidden / f32 logits)
    """
    agg = jnp.dot(a_ref[...], hall_ref[...], preferred_element_type=jnp.float32)
    agg = agg * dinv_ref[...]
    out = (jnp.dot(hrow_ref[...], w_ref[:f_pad, :], preferred_element_type=jnp.float32)
           + jnp.dot(agg.astype(jnp.bfloat16), w_ref[f_pad:, :],
                     preferred_element_type=jnp.float32)
           + b_ref[...])
    if relu:  # dropout == identity at inference
        out = jnp.maximum(out, 0.0)
    o_ref[...] = out.astype(o_ref.dtype)


def _sage_streamed(a_bin, dinv, x_pad, w_all, b_all, n_pad, f_pad, n_layers, cap):
    tm = 256 if n_pad % 256 == 0 else LANE
    n_tiles = n_pad // tm

    need = (2 * tm * n_pad * 2        # streamed A tiles (double-buffered bf16)
            + 2 * tm * LANE * 4       # dinv tiles (lane-padded f32)
            + 2 * tm * f_pad * 2      # H row tiles
            + n_pad * f_pad * 2       # resident H (single-buffered bf16)
            + 2 * f_pad * f_pad * 2   # W (single-buffered)
            + 8 * f_pad * 4           # bias
            + 2 * tm * f_pad * 4      # out tiles
            + 5 * tm * f_pad * 4)     # kernel-internal temporaries
    vmem_limit = int(min(max(need + (4 << 20), 32 << 20), cap))

    h = x_pad
    for l in range(n_layers):
        last = (l == n_layers - 1)
        out_dtype = jnp.float32 if last else jnp.bfloat16     # hidden H round-trips bf16
        kernel = functools.partial(_sage_layer_stream_kernel, f_pad=f_pad, relu=not last)
        h = pl.pallas_call(
            kernel,
            out_shape=jax.ShapeDtypeStruct((n_pad, f_pad), out_dtype),
            grid_spec=pltpu.PrefetchScalarGridSpec(
                num_scalar_prefetch=0,
                grid=(n_tiles,),
                in_specs=[
                    pl.BlockSpec((tm, n_pad), lambda i: (i, 0)),      # A stream (prefetched)
                    pl.BlockSpec((tm, 1), lambda i: (i, 0)),
                    pl.BlockSpec((tm, f_pad), lambda i: (i, 0)),
                    pl.BlockSpec((n_pad, f_pad), lambda i: (0, 0), pipeline_mode=_SINGLE_BUF),
                    pl.BlockSpec((2 * f_pad, f_pad), lambda i: (0, 0), pipeline_mode=_SINGLE_BUF),
                    pl.BlockSpec((1, f_pad), lambda i: (0, 0), pipeline_mode=_SINGLE_BUF),
                ],
                out_specs=pl.BlockSpec((tm, f_pad), lambda i: (i, 0)),
            ),
            compiler_params=pltpu.CompilerParams(
                # Row tiles are independent within a layer -> both TensorCores on v7x.
                dimension_semantics=("parallel",),
                vmem_limit_bytes=vmem_limit,
            ),
        )(a_bin, dinv, h, h, w_all[l], b_all[l])
    return h


# ----------------------------------------------------------------------------------------
# Packing + dispatch
# ----------------------------------------------------------------------------------------
def _pack_inputs(adj, x, params):
    """One-time graph/parameter preprocessing (outside the layer loop)."""
    n = adj.shape[0]
    f_pad = _round_up(max([x.shape[1]] + [w.shape[1] for w, _, _ in params]), LANE)
    n_pad = _round_up(n, LANE)

    # Unscaled 0/1 adjacency in bf16 (exact) + f32 per-row 1/max(deg,1).
    a_pad = jnp.zeros((n_pad, n_pad), jnp.float32).at[:n, :n].set(adj)
    deg = jnp.sum(a_pad, axis=-1, keepdims=True)
    dinv = (1.0 / jnp.maximum(deg, 1.0)).astype(jnp.float32)            # [n_pad, 1]
    a_bin = a_pad.astype(jnp.bfloat16)

    x_pad = jnp.zeros((n_pad, f_pad), jnp.bfloat16).at[:n, :x.shape[1]].set(
        x.astype(jnp.bfloat16))

    # W_cat[l] = [[W_self],[W_neigh]] zero-padded to [2*f_pad, f_pad] (bf16).
    w_all, b_all = [], []
    for (w_s, w_n, b) in params:
        fin, fout = w_s.shape
        w_cat = jnp.zeros((2 * f_pad, f_pad), jnp.float32)
        w_cat = w_cat.at[:fin, :fout].set(w_s)
        w_cat = w_cat.at[f_pad: f_pad + fin, :fout].set(w_n)
        w_all.append(w_cat.astype(jnp.bfloat16))
        b_all.append(jnp.zeros((1, f_pad), jnp.float32).at[:, :fout].set(b))
    return a_bin, dinv, x_pad, jnp.stack(w_all), jnp.stack(b_all), n_pad, f_pad


def sage_forward(adj, x, params, mode=None):
    """3-layer GraphSAGE('mean') forward.
    adj: [N,N] f32 dense adjacency (adj[i,j]=1 iff j is an in-neighbor of i),
    x: [N, in_feats] f32, params: list of (W_self, W_neigh, bias).
    mode: None (auto), "resident" (fully fused, VMEM-resident A) or "streamed" (row-tiled).
    """
    n = adj.shape[0]
    n_classes = params[-1][0].shape[1]
    n_layers = len(params)

    a_bin, dinv, x_pad, w_all, b_all, n_pad, f_pad = _pack_inputs(adj, x, params)

    phys = _vmem_physical_bytes()
    cap = phys - (16 << 20)                     # headroom for Mosaic internal scratch
    resident_need = _resident_vmem_bytes(n_pad, f_pad)

    if mode is None:
        mode = "resident" if resident_need + (4 << 20) <= cap else "streamed"

    if mode == "resident":
        vmem_limit = min(max(resident_need + (4 << 20), 32 << 20), cap)
        out_pad = _sage_resident(a_bin, dinv, x_pad, w_all, b_all,
                                 n_pad, f_pad, n_layers, vmem_limit)
    else:
        out_pad = _sage_streamed(a_bin, dinv, x_pad, w_all, b_all,
                                 n_pad, f_pad, n_layers, cap)

    return out_pad[:n, :n_classes]


def init_sage_params(key, in_feats, n_hidden, n_classes):
    dims = [(in_feats, n_hidden), (n_hidden, n_hidden), (n_hidden, n_classes)]
    params = []
    for (fin, fout) in dims:
        key, k1, k2, k3 = jax.random.split(key, 4)
        scale = 1.0 / jnp.sqrt(jnp.float32(fin))
        w_self = jax.random.uniform(k1, (fin, fout), jnp.float32, -scale, scale)
        w_neigh = jax.random.uniform(k2, (fin, fout), jnp.float32, -scale, scale)
        bias = jax.random.uniform(k3, (1, fout), jnp.float32, -scale, scale)
        params.append((w_self, w_neigh, bias))
    return params


if __name__ == "__main__":
    key = jax.random.PRNGKey(0)

    # Small synthetic graph.
    N = 64
    in_feats, n_hidden, n_classes = 16, 32, 8

    key, k_adj, k_feat, k_param = jax.random.split(key, 4)
    adj = (jax.random.uniform(k_adj, (N, N)) < 0.1).astype(jnp.float32)   # [N, N]
    x = jax.random.normal(k_feat, (N, in_feats), jnp.float32)             # [N, in_feats]
    params = init_sage_params(k_param, in_feats, n_hidden, n_classes)

    fwd_auto = jax.jit(lambda a_, x_: sage_forward(a_, x_, params))
    fwd_res = jax.jit(lambda a_, x_: sage_forward(a_, x_, params, mode="resident"))
    fwd_str = jax.jit(lambda a_, x_: sage_forward(a_, x_, params, mode="streamed"))

    out = jax.block_until_ready(fwd_auto(adj, x))
    out_res = jax.block_until_ready(fwd_res(adj, x))
    out_str = jax.block_until_ready(fwd_str(adj, x))
    assert out.shape == (N, n_classes), out.shape

    # --- Reference 1 (tight): pure-JAX mirror of the kernels' bf16/padded math. ---
    a_bin, dinv, x_pad, w_all, b_all, _, f_pad = _pack_inputs(adj, x, params)
    h = x_pad
    L = len(params)
    for l in range(L):
        agg = jnp.dot(a_bin, h, preferred_element_type=jnp.float32) * dinv
        z = (jnp.dot(h, w_all[l][:f_pad, :], preferred_element_type=jnp.float32)
             + jnp.dot(agg.astype(jnp.bfloat16), w_all[l][f_pad:, :],
                       preferred_element_type=jnp.float32)
             + b_all[l])
        h = jnp.maximum(z, 0.0).astype(jnp.bfloat16) if l != L - 1 else z
    ref_mirror = h[:N, :n_classes]
    assert jnp.allclose(out_res, ref_mirror, atol=2e-3, rtol=2e-3)
    assert jnp.allclose(out_str, ref_mirror, atol=2e-3, rtol=2e-3)
    assert jnp.allclose(out, ref_mirror, atol=2e-3, rtol=2e-3)

    # --- Reference 2 (loose): exact f32 DGL-SAGEConv('mean') semantics. ---
    h = x
    deg = jnp.maximum(adj.sum(-1, keepdims=True), 1.0)
    for l, (w_s, w_n, b) in enumerate(params):
        agg = (adj @ h) / deg
        h = h @ w_s + agg @ w_n + b
        if l != len(params) - 1:
            h = jnp.maximum(h, 0.0)
    assert jnp.allclose(out, h, atol=5e-2, rtol=5e-2)
    assert jnp.allclose(out_str, h, atol=5e-2, rtol=5e-2)

    print("KERNEL_OK")
</pallas_src>

<mosaic_0001>
module attributes {stable_mosaic.version = 11 : i64} {
  func.func @_fused_sage_kernel(%arg0: i32, %arg1: memref<128x128xbf16, #tpu.memory_space<vmem>>, %arg2: memref<128x1xf32, #tpu.memory_space<vmem>>, %arg3: memref<128x128xbf16, #tpu.memory_space<vmem>>, %arg4: memref<1x256x128xbf16, #tpu.memory_space<vmem>>, %arg5: memref<1x1x128xf32, #tpu.memory_space<vmem>>, %arg6: memref<128x128xf32, #tpu.memory_space<vmem>>, %arg7: memref<128x128xbf16, #tpu.memory_space<vmem>>) attributes {dimension_semantics = [#tpu.dimension_semantics<arbitrary>], iteration_bounds = array<i64: 3>, scalar_prefetch = 0 : i64, scratch_operands = 1 : i64, tpu.core_type = #tpu.core_type<tc>, window_params = [{pipeline_mode = #tpu.pipeline_mode<synchronous>, transform_indices = @transform_0, window_bounds = array<i64: 128, 128>}, {pipeline_mode = #tpu.pipeline_mode<synchronous>, transform_indices = @transform_1, window_bounds = array<i64: 128, 1>}, {pipeline_mode = #tpu.pipeline_mode<synchronous>, transform_indices = @transform_2, window_bounds = array<i64: 128, 128>}, {transform_indices = @transform_3, window_bounds = array<i64: 1, 256, 128>}, {transform_indices = @transform_4, window_bounds = array<i64: 1, 1, 128>}, {pipeline_mode = #tpu.pipeline_mode<synchronous>, transform_indices = @transform_5, window_bounds = array<i64: 128, 128>}]} {
    %c0_i32 = arith.constant 0 : i32
    %0 = arith.cmpi eq, %arg0, %c0_i32 : i32
    %1 = arith.extui %0 : i1 to i32
    %c0_i32_0 = arith.constant 0 : i32
    %2 = arith.cmpi ne, %1, %c0_i32_0 : i32
    scf.if %2 {
      %c0_19 = arith.constant 0 : index
      %c0_20 = arith.constant 0 : index
      %27 = vector.load %arg3[%c0_19, %c0_20] : memref<128x128xbf16, #tpu.memory_space<vmem>>, vector<128x128xbf16>
      %c0_21 = arith.constant 0 : index
      %c0_22 = arith.constant 0 : index
      %28 = vector.load %arg7[%c0_21, %c0_22] : memref<128x128xbf16, #tpu.memory_space<vmem>>, vector<128x128xbf16>
      tpu.vector_store %arg7[%c0_21, %c0_22], %27 {strides = array<i32>} : memref<128x128xbf16, #tpu.memory_space<vmem>>, vector<128x128xbf16>,
    } else {
    }
    %c0 = arith.constant 0 : index
    %c0_1 = arith.constant 0 : index
    %3 = vector.load %arg7[%c0, %c0_1] : memref<128x128xbf16, #tpu.memory_space<vmem>>, vector<128x128xbf16>
    %c0_2 = arith.constant 0 : index
    %c0_3 = arith.constant 0 : index
    %4 = vector.load %arg1[%c0_2, %c0_3] : memref<128x128xbf16, #tpu.memory_space<vmem>>, vector<128x128xbf16>
    %cst = arith.constant dense<0.000000e+00> : vector<128x128xf32>
    %5 = tpu.matmul %4, %3, %cst {dimension_numbers = #tpu.dot_dimension_numbers<[1], [0], [0], [1], [0, 0, 1, 1], [], []>} : vector<128x128xbf16>, vector<128x128xbf16>, vector<128x128xf32> -> vector<128x128xf32>
    %c0_4 = arith.constant 0 : index
    %c0_5 = arith.constant 0 : index
    %6 = vector.load %arg2[%c0_4, %c0_5] : memref<128x1xf32, #tpu.memory_space<vmem>>, vector<128x1xf32>
    %7 = vector.broadcast %6 : vector<128x1xf32> to vector<128x128xf32>
    %8 = arith.mulf %5, %7 : vector<128x128xf32>
    %c0_6 = arith.constant 0 : index
    %c0_7 = arith.constant 0 : index
    %c0_8 = arith.constant 0 : index
    %9 = vector.load %arg4[%c0_6, %c0_7, %c0_8] : memref<1x256x128xbf16, #tpu.memory_space<vmem>>, vector<1x128x128xbf16>
    %10 = vector.shape_cast %9 : vector<1x128x128xbf16> to vector<128x128xbf16>
    %cst_9 = arith.constant dense<0.000000e+00> : vector<128x128xf32>
    %11 = tpu.matmul %3, %10, %cst_9 {dimension_numbers = #tpu.dot_dimension_numbers<[1], [0], [0], [1], [0, 0, 1, 1], [], []>} : vector<128x128xbf16>, vector<128x128xbf16>, vector<128x128xf32> -> vector<128x128xf32>
    %12 = arith.truncf %8 : vector<128x128xf32> to vector<128x128xbf16>
    %c0_10 = arith.constant 0 : index
    %c128 = arith.constant 128 : index
    %c0_11 = arith.constant 0 : index
    %13 = vector.load %arg4[%c0_10, %c128, %c0_11] : memref<1x256x128xbf16, #tpu.memory_space<vmem>>, vector<1x128x128xbf16>
    %14 = vector.shape_cast %13 : vector<1x128x128xbf16> to vector<128x128xbf16>
    %cst_12 = arith.constant dense<0.000000e+00> : vector<128x128xf32>
    %15 = tpu.matmul %12, %14, %cst_12 {dimension_numbers = #tpu.dot_dimension_numbers<[1], [0], [0], [1], [0, 0, 1, 1], [], []>} : vector<128x128xbf16>, vector<128x128xbf16>, vector<128x128xf32> -> vector<128x128xf32>
    %16 = arith.addf %11, %15 : vector<128x128xf32>
    %c0_13 = arith.constant 0 : index
    %c0_14 = arith.constant 0 : index
    %c0_15 = arith.constant 0 : index
    %17 = vector.load %arg5[%c0_13, %c0_14, %c0_15] : memref<1x1x128xf32, #tpu.memory_space<vmem>>, vector<1x1x128xf32>
    %18 = vector.shape_cast %17 : vector<1x1x128xf32> to vector<1x128xf32>
    %19 = vector.broadcast %18 : vector<1x128xf32> to vector<128x128xf32>
    %20 = arith.addf %16, %19 : vector<128x128xf32>
    %c2_i32 = arith.constant 2 : i32
    %21 = arith.cmpi ne, %arg0, %c2_i32 : i32
    %22 = arith.extui %21 : i1 to i32
    %c0_i32_16 = arith.constant 0 : i32
    %23 = arith.cmpi ne, %22, %c0_i32_16 : i32
    scf.if %23 {
      %cst_19 = arith.constant 0.000000e+00 : f32
      %27 = vector.broadcast %cst_19 : f32 to vector<128x128xf32>
      %28 = arith.maximumf %20, %27 : vector<128x128xf32>
      %29 = arith.truncf %28 : vector<128x128xf32> to vector<128x128xbf16>
      %c0_20 = arith.constant 0 : index
      %c0_21 = arith.constant 0 : index
      %30 = vector.load %arg7[%c0_20, %c0_21] : memref<128x128xbf16, #tpu.memory_space<vmem>>, vector<128x128xbf16>
      tpu.vector_store %arg7[%c0_20, %c0_21], %29 {strides = array<i32>} : memref<128x128xbf16, #tpu.memory_space<vmem>>, vector<128x128xbf16>,
    } else {
    }
    %c2_i32_17 = arith.constant 2 : i32
    %24 = arith.cmpi eq, %arg0, %c2_i32_17 : i32
    %25 = arith.extui %24 : i1 to i32
    %c0_i32_18 = arith.constant 0 : i32
    %26 = arith.cmpi ne, %25, %c0_i32_18 : i32
    scf.if %26 {
      %c0_19 = arith.constant 0 : index
      %c0_20 = arith.constant 0 : index
      %27 = vector.load %arg6[%c0_19, %c0_20] : memref<128x128xf32, #tpu.memory_space<vmem>>, vector<128x128xf32>
      tpu.vector_store %arg6[%c0_19, %c0_20], %20 {strides = array<i32>} : memref<128x128xf32, #tpu.memory_space<vmem>>, vector<128x128xf32>,
    } else {
    }
    return
  }
  func.func @transform_0(%arg0: i32) -> (i32, i32) {
    %c0_i32 = arith.constant 0 : i32
    %c0_i32_0 = arith.constant 0 : i32
    %c0_i32_1 = arith.constant 0 : i32
    return %c0_i32, %c0_i32_0 : i32, i32
  }
  func.func @transform_1(%arg0: i32) -> (i32, i32) {
    %c0_i32 = arith.constant 0 : i32
    %c0_i32_0 = arith.constant 0 : i32
    %c0_i32_1 = arith.constant 0 : i32
    return %c0_i32, %c0_i32_0 : i32, i32
  }
  func.func @transform_2(%arg0: i32) -> (i32, i32) {
    %c0_i32 = arith.constant 0 : i32
    %c0_i32_0 = arith.constant 0 : i32
    %c0_i32_1 = arith.constant 0 : i32
    return %c0_i32, %c0_i32_0 : i32, i32
  }
  func.func @transform_3(%arg0: i32) -> (i32, i32, i32) {
    %c0_i32 = arith.constant 0 : i32
    %c0_i32_0 = arith.constant 0 : i32
    %c0_i32_1 = arith.constant 0 : i32
    return %arg0, %c0_i32, %c0_i32_0 : i32, i32, i32
  }
  func.func @transform_4(%arg0: i32) -> (i32, i32, i32) {
    %c0_i32 = arith.constant 0 : i32
    %c0_i32_0 = arith.constant 0 : i32
    %c0_i32_1 = arith.constant 0 : i32
    return %arg0, %c0_i32, %c0_i32_0 : i32, i32, i32
  }
  func.func @transform_5(%arg0: i32) -> (i32, i32) {
    %c0_i32 = arith.constant 0 : i32
    %c0_i32_0 = arith.constant 0 : i32
    %c0_i32_1 = arith.constant 0 : i32
    return %c0_i32, %c0_i32_0 : i32, i32
  }
}

</mosaic_0001>

<bundles_post_ra>
// kernel: _lambda_.1
= control target key start
LH: loop header
LB: loop body
LE: loop exit
PB: predicated region body
PF: predicated region fallthrough
CT: control target
= control target key end

     0   :  { %10 = vsyncpa [#allocation4], 0  ;;  %s1688_s0 = inlined_call_operand.vmem [shape: bf16[128,128], index: 0, kind: input, shape index: {}]   ;;  %s1689_s1 = inlined_call_operand.vmem [shape: f32[128,1], index: 1, kind: input, shape index: {}]   ;;  %s1690_s2 = inlined_call_operand.vmem [shape: bf16[128,128], index: 2, kind: input, shape index: {}]   ;;  %s1691_s3 = inlined_call_operand.hbm [shape: bf16[3,256,128], index: 3, kind: input, shape index: {}]   ;;  %s1692_s4 = inlined_call_operand.vmem [shape: f32[3,1,128], index: 4, kind: input, shape index: {}]   ;;  %s1693_s5 = inlined_call_operand.vmem [shape: f32[128,128], index: 5, kind: output, shape index: {}]  }
   0x1   :  { %12 = vsyncpa [#allocation4 + $0x1], 0  ;;  %s1335_s18 = smov 0   ;;  %s1337_s19 = smov 0  }
   0x2   :  { %s1339_s20 = smov 0   ;;  %s1341_s21 = smov 0  }
   0x3 LB: > { %s1354_s22 = sadd.s32 4294967295, %s1300_s21   ;;  %s1357_s23 = sadd.s32 1, %s1300_s21   ;;  %s1300_s21 = sphi %s1341_s21, %s1700_s21   ;;  %s1296_s20 = sphi %s1339_s20, %s1699_s20   ;;  %s1292_s19 = sphi %s1337_s19, %s1698_s19   ;;  %s1288_s18 = sphi %s1335_s18, %s1697_s18  }
   0x4   : > { %s85_s24 = ssub.s32 %s1300_s21, %s1357_s23  ;;  %s88_s25 = sadd.s32 1, %s1296_s20 }
   0x5   : > { %p86_p0 = scmp.eq.s32.totalorder %s85_s24, 0  ;;  %p95_p1 = scmp.ne.s32.totalorder %s1296_s20, %s1292_s19 }
   0x6   : > { %p96_p2 = scmp.eq.s32.totalorder %s1300_s21, 0  ;;  %p101_p3 = scmp.ne.s32.totalorder %s1292_s19, %s1288_s18 }
   0x7   : > { %s1367_s26 = scalar_select %p86_p0, %s1296_s20, %s88_s25  }
   0x8   : > { %p1369_p4 = por %p96_p2, %p95_p1  ;;  %p102_p5 = scmp.eq.s32.totalorder %s1354_s22, 0 }
   0x9   : > { %p1196_p6 = scmp.lt.s32.totalorder %s1300_s21, 3  ;;  %s181_s29 = sand.u32 1, %s1296_s20  }
   0xa   : > { %p1375_p7 = por %p102_p5, %p101_p3  ;;  %s948_s30 = sshll.u32 %s181_s29, 7 }
   0xb   : > { %s1086_s6 = sshll.u32 %s1300_s21, 7  ;;  %s185_s10 = scalar_lea.vmem [#allocation3], %s948_s30 }
   0xc   : > { %s190_s9 = scalar_lea.hbm %s1691_s3, %s1086_s6  ;;  %s193_s11 = sshll.u32 %s185_s10, 4  ;;  %s194_s11 = int_to_ptr.vmem [resolvable:$true] %s193_s11 }
   0xd   : > { %s191_s12 = sshll.u32 %s190_s9, 4  ;;  %p1386_p8 = pnand %p1196_p6, %p1369_p4  ;;  %s192_s12 = int_to_ptr.hbm [resolvable:$true] %s191_s12 }
   0xe   : > { %p951_p9 = scmp.ge.s32.totalorder %s1300_s21, 1  ;;  %s182_s14 = scalar_lea.sflag [#allocation4], %s181_s29 }
   0xf   : > { %s1236_s15 = sshra.s32 %s192_s12, 4  ;;  %p1240_p11 = pneg %p1386_p8  ;;  %s1237_s15 = int_to_ptr.hbm [resolvable:$true] %s1236_s15 }
  0x10   : > { %s1238_s16 = scalar_lea.hbm %s1237_s15, 128  ;;  %s1243_s24 = scalar_lea.hbm %s1691_s3, 384 }
  0x11   : > { %p1239_p10 = scmp.ne.s32.totalorder %s1237_s15, %s1238_s16  ;;  %p1244_p0 = scmp.lt.s32.totalorder %s1237_s15, %s1691_s3 }
  0x12   : > { %p1245_p1 = scmp.lt.s32.totalorder %s1243_s24, %s1238_s16 }
  0x13   : > { %p1241_p12 = pnand %p1240_p11, %p1239_p10 }
  0x14   : > { %p1246_p2 = por %p1245_p1, %p1244_p0 }
  0x15   : > { %p1242_p13 = pneg %p1241_p12 }
  0x17   : > { %p1247_p3 = pnand %p1246_p2, %p1242_p13 }
  0x19   : > { %1250 = shalt.err (!%p1247_p3)
}
  0x1a   : > { %s1302_s29 = smov 64   ;;  %s1303_s30 = smov 4  }
  0x1b   : > { %1195 = dma.hbm_to_vmem [thread:$0]  (!%p1386_p8), %s192_s12, 2048, %s194_s11, %s182_s14, %s1302_s29, %s1302_s29, %s1303_s30  }
  0x1c   : > { %p207_p4 = scmp.lt.s32.totalorder %s1300_s21, 4 }
  0x1e   : > { %p208_p5 = pnand %p951_p9, %p207_p4 }
  0x1f   : > { %s213_s6 = sand.u32 (!%p208_p5), 1, %s1292_s19  }
  0x20   : > { %211 = sbr.rel (%p208_p5) target bundleno = 483 (0x1e3), region = 40  ;;  %s952_s7 = sshll.u32 (!%p208_p5), %s213_s6, 7 }
  0x21   : > { %s214_s8 = scalar_lea.sflag (!%p208_p5), [#allocation4], %s213_s6  ;;  %s1405_s9 = scalar_lea.vmem (!%p208_p5), [#allocation3], %s952_s7 }
  0x25   : > { %1283 = dma.done.wait (%p1375_p7), %s214_s8, 2048  }
  0x26   : > { %1285 = vsyncadd (%p1375_p7), %s214_s8, 4294965248  ;;  %p243_p6 = scmp.lt.s32.totalorder %s1354_s22, 2  ;;  %p953_p8 = scmp.ne.s32.totalorder %s1354_s22, 0 }
  0x28   : > { %s1413_s10 = scalar_select %p243_p6, %s1354_s22, 2 }
  0x29   : > { %249 = sbr.rel (%p953_p8) target bundleno = 55 (0x37), region = 48 }
  0x2a   : > { %s245_s12 = scalar_lea.vmem %s1692_s4, %s1413_s10 }
  0x2e   : > { %v250_v0 = vld [vmem:[%s1690_s2] sm:$0xff]   ;;  %v252_v1 = vld [vmem:[%s1690_s2 + $0x8] sm:$0xff]   ;;  %v254_v2 = vld [vmem:[%s1690_s2 + $0x10] sm:$0xff]  }
  0x2f   : > { %266 = vst [vmem:[#allocation2] sm:$0xff] %v250_v0   ;;  %v256_v3 = vld [vmem:[%s1690_s2 + $0x18] sm:$0xff]   ;;  %v258_v4 = vld [vmem:[%s1690_s2 + $0x20] sm:$0xff]   ;;  %v260_v5 = vld [vmem:[%s1690_s2 + $0x28] sm:$0xff]  }
  0x30   : > { %268 = vst [vmem:[#allocation2 + $0x8] sm:$0xff] %v252_v1   ;;  %v262_v6 = vld [vmem:[%s1690_s2 + $0x30] sm:$0xff]   ;;  %v264_v7 = vld [vmem:[%s1690_s2 + $0x38] sm:$0xff]  }
  0x31   : > { %270 = vst [vmem:[#allocation2 + $0x10] sm:$0xff] %v254_v2  }
  0x32   : > { %272 = vst [vmem:[#allocation2 + $0x18] sm:$0xff] %v256_v3  }
  0x33   : > { %274 = vst [vmem:[#allocation2 + $0x20] sm:$0xff] %v258_v4  }
  0x34   : > { %276 = vst [vmem:[#allocation2 + $0x28] sm:$0xff] %v260_v5  }
  0x35   : > { %278 = vst [vmem:[#allocation2 + $0x30] sm:$0xff] %v262_v6  }
  0x36   : > { %280 = vst [vmem:[#allocation2 + $0x38] sm:$0xff] %v264_v7  }
  0x37 PF: > { %v459_v9 = vld [vmem:[%s1689_s1] sm:$0xff]  ;;  %v1304_v10 = vmov 0   ;;  %v461_v12 = vld [vmem:[%s1689_s1 + $0x10] sm:$0xff]  ;;  %v460_v14 = vld [vmem:[%s1689_s1 + $0x8] sm:$0xff]  ;;  %p1082_p7 = scmp.eq.s32.totalorder %s1354_s22, 2 }
  0x38   : > { %1232 = vset.pattern.permute.xlu0 %v1304_v10  ;;  %1233 = vset.pattern.permute.xlu1 %v1304_v10  ;;  %v462_v15 = vld [vmem:[%s1689_s1 + $0x18] sm:$0xff]  ;;  %v463_v18 = vld [vmem:[%s1689_s1 + $0x20] sm:$0xff]  ;;  %v464_v19 = vld [vmem:[%s1689_s1 + $0x28] sm:$0xff] }
  0x39   : > { %477 = vperm.xlu0 %1232, %v459_v9   ;;  %1234 = vset.pattern.permute.xlu2 %v1304_v10  ;;  %v1472_v17 = vld [vmem:[#allocation2 + $0x18] sm:$0xff]  ;;  %v471_v20 = vld [vmem:[%s1689_s1 + $0x60] sm:$0xff]  ;;  %v1485_v21 = vld [vmem:[#allocation2 + $0x10] sm:$0xff] }
  0x3a   : > { %487 = vperm.xlu1 %1233, %v461_v12   ;;  %v1468_v16 = vld [vmem:[#allocation2 + $0x20] sm:$0xff]  ;;  %537 = vperm.xlu2 %1234, %v471_v20   ;;  %v1489_v22 = vld [vmem:[#allocation2 + $0x8] sm:$0xff]  ;;  %v474_v23 = vld [vmem:[%s1689_s1 + $0x78] sm:$0xff] }
  0x3b   : > { %v1458_v13 = vld [vmem:[#allocation2 + $0x28] sm:$0xff]  ;;  %v465_v24 = vld [vmem:[%s1689_s1 + $0x30] sm:$0xff]  ;;  %v1499_v25 = vld [vmem:[#allocation2] sm:$0xff] }
  0x3c   : > { %v1451_v11 = vld [vmem:[#allocation2 + $0x30] sm:$0xff]  ;;  %v1095_v26 = vld [vmem:[%s1688_s0] sm:$0xff]  ;;  %v468_v29 = vld [vmem:[%s1689_s1 + $0x48] sm:$0xff] }
  0x3d   : > { %v1444_v8 = vld [vmem:[#allocation2 + $0x38] sm:$0xff]  ;;  %v1101_v27 = vld [vmem:[%s1688_s0 + $0x30] sm:$0xff]  ;;  %v467_v28 = vld [vmem:[%s1689_s1 + $0x40] sm:$0xff] }
  0x3e   : > { %410 = vmatpush.bf16.msra.mxu0 %v1444_v8  ;;  %1166 = vmatpush.bf16.msra.mxu3 %v1444_v8  ;;  %v472_v30 = vld [vmem:[%s1689_s1 + $0x68] sm:$0xff]  ;;  %v473_v31 = vld [vmem:[%s1689_s1 + $0x70] sm:$0xff]  ;;  %v470_v32 = vld [vmem:[%s1689_s1 + $0x58] sm:$0xff] }
  0x3f   : > { %v1096_v33 = vld [vmem:[%s1688_s0 + $0x8] sm:$0xff]  ;;  %v1102_v34 = vld [vmem:[%s1688_s0 + $0x38] sm:$0xff]  ;;  %v469_v36 = vld [vmem:[%s1689_s1 + $0x50] sm:$0xff] }
  0x40   : > { %v466_v35 = vld [vmem:[%s1689_s1 + $0x38] sm:$0xff]  ;;  %v1097_v37 = vld [vmem:[%s1688_s0 + $0x10] sm:$0xff]  ;;  %v1099_v40 = vld [vmem:[%s1688_s0 + $0x20] sm:$0xff] }
  0x41   : > { %482 = vperm.xlu0 %1232, %v460_v14   ;;  %v1098_v38 = vld [vmem:[%s1688_s0 + $0x18] sm:$0xff]  ;;  %v1109_v41 = vld [vmem:[%s1405_s9 + $0x30] sm:$0xff]  ;;  %v1108_v42 = vld [vmem:[%s1405_s9 + $0x28] sm:$0xff] }
  0x42   : > { %411 = vmatpush.bf16.msra.mxu0 %v1451_v11  ;;  %1167 = vmatpush.bf16.msra.mxu3 %v1451_v11  ;;  %v1110_v39 = vld [vmem:[%s1405_s9 + $0x38] sm:$0xff]  ;;  %v1107_v43 = vld [vmem:[%s1405_s9 + $0x20] sm:$0xff]  ;;  %v1100_v46 = vld [vmem:[%s1688_s0 + $0x28] sm:$0xff] }
  0x43   : > { %492 = vperm.xlu1 %1233, %v462_v15   ;;  %542 = vperm.xlu2 %1234, %v472_v30   ;;  %v1118_v44 = vld [vmem:[%s1405_s9 + $0x78] sm:$0xff]  ;;  %v1117_v47 = vld [vmem:[%s1405_s9 + $0x70] sm:$0xff]  ;;  %v1116_v49 = vld [vmem:[%s1405_s9 + $0x68] sm:$0xff] }
  0x44   : > { %756 = vmatpush.bf16.msra.mxu2 %v1110_v39  ;;  %659 = vmatpush.bf16.msra.mxu1 %v1118_v44  ;;  %v1106_v45 = vld [vmem:[%s1405_s9 + $0x18] sm:$0xff]  ;;  %v1105_v48 = vld [vmem:[%s1405_s9 + $0x10] sm:$0xff]  ;;  %v1104_v50 = vld [vmem:[%s1405_s9 + $0x8] sm:$0xff] }
  0x45   : > { %v1115_v51 = vld [vmem:[%s1405_s9 + $0x60] sm:$0xff]  ;;  %v1114_v53 = vld [vmem:[%s1405_s9 + $0x58] sm:$0xff]  ;;  %v1113_v54 = vld [vmem:[%s1405_s9 + $0x50] sm:$0xff] }
  0x46   : > { %412 = vmatpush.bf16.msra.mxu0 %v1458_v13  ;;  %1168 = vmatpush.bf16.msra.mxu3 %v1458_v13  ;;  %v1103_v52 = vld [vmem:[%s1405_s9] sm:$0xff]  ;;  %v1112_v55 = vld [vmem:[%s1405_s9 + $0x48] sm:$0xff] }
  0x47   : > { %v1111_v56 = vld [vmem:[%s1405_s9 + $0x40] sm:$0xff] }
  0x48   : > { %757 = vmatpush.bf16.msra.mxu2 %v1109_v41  ;;  %660 = vmatpush.bf16.msra.mxu1 %v1117_v47 }
  0x49   : > { %497 = vperm.xlu0 %1232, %v463_v18  }
  0x4a   : > { %413 = vmatpush.bf16.msra.mxu0 %v1468_v16  ;;  %1169 = vmatpush.bf16.msra.mxu3 %v1468_v16 }
  0x4b   : > { %502 = vperm.xlu1 %1233, %v464_v19   ;;  %547 = vperm.xlu2 %1234, %v473_v31  }
  0x4c   : > { %758 = vmatpush.bf16.msra.mxu2 %v1108_v42  ;;  %661 = vmatpush.bf16.msra.mxu1 %v1116_v49 }
  0x4e   : > { %414 = vmatpush.bf16.msra.mxu0 %v1472_v17  ;;  %1170 = vmatpush.bf16.msra.mxu3 %v1472_v17 }
  0x50   : > { %759 = vmatpush.bf16.msra.mxu2 %v1107_v43  ;;  %662 = vmatpush.bf16.msra.mxu1 %v1115_v51 }
  0x51   : > { %552 = vperm.xlu0 %1232, %v474_v23  }
  0x52   : > { %415 = vmatpush.bf16.msra.mxu0 %v1485_v21  ;;  %1171 = vmatpush.bf16.msra.mxu3 %v1485_v21 }
  0x53   : > { %507 = vperm.xlu1 %1233, %v465_v24   ;;  %512 = vperm.xlu2 %1234, %v466_v35  }
  0x54   : > { %760 = vmatpush.bf16.msra.mxu2 %v1106_v45  ;;  %663 = vmatpush.bf16.msra.mxu1 %v1114_v53 }
  0x56   : > { %416 = vmatpush.bf16.msra.mxu0 %v1489_v22  ;;  %1172 = vmatpush.bf16.msra.mxu3 %v1489_v22 }
  0x58   : > { %761 = vmatpush.bf16.msra.mxu2 %v1105_v48  ;;  %664 = vmatpush.bf16.msra.mxu1 %v1113_v54 }
  0x59   : > { %517 = vperm.xlu0 %1232, %v467_v28  }
  0x5a   : > { %417 = vmatpush.bf16.msra.mxu0 %v1499_v25  ;;  %1173 = vmatpush.bf16.msra.mxu3 %v1499_v25 }
  0x5b   : > { %522 = vperm.xlu1 %1233, %v468_v29   ;;  %527 = vperm.xlu2 %1234, %v469_v36  }
  0x5c   : > { %762 = vmatpush.bf16.msra.mxu2 %v1104_v50  ;;  %665 = vmatpush.bf16.msra.mxu1 %v1112_v55 }
  0x5d   : > { %418 = vmatmul.bf16.vlgmr.msra.gmra.mxu0 %v1095_v26  ;;  %448 = vmatmul.bf16.vlgmr.msra.gmra.mxu3 %v1101_v27 }
  0x5e   : > { %1174 = vmatpush.bf16.msrb.mxu3 %v1118_v44 }
  0x60   : > { %763 = vmatpush.bf16.msra.mxu2 %v1103_v52  ;;  %666 = vmatpush.bf16.msra.mxu1 %v1111_v56 }
  0x61   : > { %532 = vperm.xlu0 %1232, %v470_v32  }
  0x62   : > { %1175 = vmatpush.bf16.msrb.mxu3 %v1117_v47 }
  0x63   : > { %764 = vmatmul.bf16.vlgmr.msra.gmra.mxu2 %v1499_v25 }
  0x66   : > { %1176 = vmatpush.bf16.msrb.mxu3 %v1116_v49 }
  0x6a   : > { %1177 = vmatpush.bf16.msrb.mxu3 %v1115_v51 }
  0x6d   : > { %423 = vmatmul.bf16.gmra.mxu0 %v1096_v33  ;;  %453 = vmatmul.bf16.gmra.mxu3 %v1102_v34 }
  0x6e   : > { %1178 = vmatpush.bf16.msrb.mxu3 %v1114_v53 }
  0x72   : > { %1179 = vmatpush.bf16.msrb.mxu3 %v1113_v54 }
  0x73   : > { %769 = vmatmul.bf16.gmra.mxu2 %v1489_v22 }
  0x76   : > { %1180 = vmatpush.bf16.msrb.mxu3 %v1112_v55 }
  0x7a   : > { %1181 = vmatpush.bf16.msrb.mxu3 %v1111_v56 }
  0x7d   : > { %428 = vmatmul.bf16.gmra.mxu0 %v1097_v37 }
  0x7e   : > { %1182 = vmatpush.bf16.msra.mxu3 %v1110_v39 }
  0x82   : > { %1183 = vmatpush.bf16.msra.mxu3 %v1109_v41 }
  0x83   : > { %774 = vmatmul.bf16.gmra.mxu2 %v1485_v21 }
  0x86   : > { %1184 = vmatpush.bf16.msra.mxu3 %v1108_v42 }
  0x8a   : > { %1185 = vmatpush.bf16.msra.mxu3 %v1107_v43 }
  0x8d   : > { %433 = vmatmul.bf16.gmra.mxu0 %v1098_v38 }
  0x8e   : > { %1186 = vmatpush.bf16.msra.mxu3 %v1106_v45 }
  0x92   : > { %1187 = vmatpush.bf16.msra.mxu3 %v1105_v48 }
  0x93   : > { %779 = vmatmul.bf16.gmra.mxu2 %v1472_v17 }
  0x94   : > { %v538_v59 = vpop.permute.xlu2 %537 }
  0x96   : > { %1188 = vmatpush.bf16.msra.mxu3 %v1104_v50 }
  0x9a   : > { %1189 = vmatpush.bf16.msra.mxu3 %v1103_v52 }
  0x9d   : > { %438 = vmatmul.bf16.gmra.mxu0 %v1099_v40  ;;  %v543_v4 = vpop.permute.xlu2 %542 }
  0xa3   : > { %784 = vmatmul.bf16.gmra.mxu2 %v1468_v16 }
  0xa5   : > { %v548_v21 = vpop.permute.xlu2 %547 }
  0xab   : > { %v478_v57 = vpop.permute.xlu0 %477 }
  0xac   : > { %v488_v2 = vpop.permute.xlu1 %487 }
  0xad   : > { %443 = vmatmul.bf16.gmra.mxu0 %v1100_v46  ;;  %v513_v33 = vpop.permute.xlu2 %512 }
  0xb3   : > { %v483_v61 = vpop.permute.xlu0 %482  ;;  %789 = vmatmul.bf16.gmra.mxu2 %v1458_v13 }
  0xb5   : > { %v493_v14 = vpop.permute.xlu1 %492 }
  0xbb   : > { %v498_v10 = vpop.permute.xlu0 %497 }
  0xbd   : > { %v503_v27 = vpop.permute.xlu1 %502 }
  0xc3   : > { %v553_v17 = vpop.permute.xlu0 %552 }
  0xc5   : > { %v508_v16 = vpop.permute.xlu1 %507 }
  0xcb   : > { %v518_v39 = vpop.permute.xlu0 %517 }
  0xcd   : > { %v523_v40 = vpop.permute.xlu1 %522 }
  0xd3   : > { %v533_v45 = vpop.permute.xlu0 %532 }
  0xda   : > { %v419_v58 = vpop.f32.mrf.mxu0 }
  0xdb   : > { %v555_v63 = vmul.f32 %v478_v57, %v419_v58 }
  0xe0   : > { %v449_v60 = vpop.f32.mrf.mxu3 }
  0xe1   : > { %v567_v3 = vmul.f32 %v538_v59, %v449_v60 }
  0xe2   : > { %v421_v62 = vpop.f32.mrf.mxu0 }
  0xe3   : > { %v556_v0 = vmul.f32 %v483_v61, %v421_v62 }
  0xe5   : > { %v587_v1 = vpack.c.bf16 %v556_v0, %v555_v63 }
  0xe6   : > { %v765_v50 = vpop.f32.mrf.mxu2 }
  0xe7   : > { %667 = vmatmul.bf16.vlgmr.msra.gmra.mxu1 %v587_v1 }
  0xe8   : > { %v451_v5 = vpop.f32.mrf.mxu3 }
  0xe9   : > { %v568_v6 = vmul.f32 %v543_v4, %v451_v5 }
  0xea   : > { %v424_v7 = vpop.f32.mrf.mxu0 }
  0xeb   : > { %v593_v9 = vpack.c.bf16 %v568_v6, %v567_v3  ;;  %v557_v18 = vmul.f32 %v488_v2, %v424_v7 }
  0xed   : > { %697 = vmatmul.bf16.vlgmr.msrb.gmra.mxu3 %v593_v9 }
  0xee   : > { %v767_v51 = vpop.f32.mrf.mxu2 }
  0xf0   : > { %v454_v12 = vpop.f32.mrf.mxu3 }
  0xf1   : > { %v569_v23 = vmul.f32 %v548_v21, %v454_v12 }
  0xf2   : > { %v426_v15 = vpop.f32.mrf.mxu0 }
  0xf3   : > { %v558_v19 = vmul.f32 %v493_v14, %v426_v15 }
  0xf5   : > { %v588_v20 = vpack.c.bf16 %v558_v19, %v557_v18 }
  0xf6   : > { %v770_v52 = vpop.f32.mrf.mxu2 }
  0xf7   : > { %672 = vmatmul.bf16.gmra.mxu1 %v588_v20 }
  0xf8   : > { %v456_v22 = vpop.f32.mrf.mxu3 }
  0xf9   : > { %v570_v24 = vmul.f32 %v553_v17, %v456_v22 }
  0xfa   : > { %v429_v25 = vpop.f32.mrf.mxu0 }
  0xfb   : > { %v594_v26 = vpack.c.bf16 %v570_v24, %v569_v23  ;;  %v559_v29 = vmul.f32 %v498_v10, %v429_v25 }
  0xfd   : > { %702 = vmatmul.bf16.gmra.mxu3 %v594_v26 }
  0xfe   : > { %v772_v57 = vpop.f32.mrf.mxu2 }
 0x102   : > { %v431_v28 = vpop.f32.mrf.mxu0 }
 0x103   : > { %v560_v30 = vmul.f32 %v503_v27, %v431_v28 }
 0x105   : > { %v589_v31 = vpack.c.bf16 %v560_v30, %v559_v29 }
 0x106   : > { %v775_v63 = vpop.f32.mrf.mxu2 }
 0x107   : > { %677 = vmatmul.bf16.gmra.mxu1 %v589_v31 }
 0x10a   : > { %v434_v32 = vpop.f32.mrf.mxu0 }
 0x10b   : > { %v561_v35 = vmul.f32 %v508_v16, %v434_v32 }
 0x10d   : > { %794 = vmatmul.bf16.vlgmr.msra.gmra.mxu3 %v1451_v11  ;;  %v528_v11 = vpop.permute.xlu2 %527 }
 0x10e   : > { %v777_v6 = vpop.f32.mrf.mxu2 }
 0x112   : > { %v436_v34 = vpop.f32.mrf.mxu0 }
 0x113   : > { %v562_v36 = vmul.f32 %v513_v33, %v436_v34 }
 0x115   : > { %v590_v37 = vpack.c.bf16 %v562_v36, %v561_v35 }
 0x116   : > { %v780_v14 = vpop.f32.mrf.mxu2 }
 0x117   : > { %682 = vmatmul.bf16.gmra.mxu1 %v590_v37 }
 0x11a   : > { %v439_v38 = vpop.f32.mrf.mxu0 }
 0x11b   : > { %v563_v42 = vmul.f32 %v518_v39, %v439_v38 }
 0x11d   : > { %799 = vmatmul.bf16.gmra.mxu3 %v1444_v8  ;;  %v1235_v8 = vld [vmem:[%s245_s12] ss:$0 sm:$0xff] }
 0x11e   : > { %v782_v23 = vpop.f32.mrf.mxu2 }
 0x122   : > { %v441_v41 = vpop.f32.mrf.mxu0 }
 0x123   : > { %v564_v13 = vmul.f32 %v523_v40, %v441_v41 }
 0x125   : > { %v591_v43 = vpack.c.bf16 %v564_v13, %v563_v42 }
 0x126   : > { %v785_v31 = vpop.f32.mrf.mxu2 }
 0x127   : > { %687 = vmatmul.bf16.gmra.mxu1 %v591_v43 }
 0x12a   : > { %v444_v44 = vpop.f32.mrf.mxu0 }
 0x12b   : > { %v565_v47 = vmul.f32 %v528_v11, %v444_v44 }
 0x12e   : > { %v787_v38 = vpop.f32.mrf.mxu2 }
 0x132   : > { %v446_v46 = vpop.f32.mrf.mxu0 }
 0x133   : > { %v566_v48 = vmul.f32 %v533_v45, %v446_v46 }
 0x135   : > { %v592_v49 = vpack.c.bf16 %v566_v48, %v565_v47 }
 0x136   : > { %v790_v44 = vpop.f32.mrf.mxu2 }
 0x137   : > { %692 = vmatmul.bf16.gmra.mxu1 %v592_v49 }
 0x13e   : > { %v792_v47 = vpop.f32.mrf.mxu2 }
 0x164   : > { %v668_v53 = vpop.f32.mrf.mxu1 }
 0x165   : > { %v766_v54 = vadd.f32 %v765_v50, %v668_v53 }
 0x167   : > { %v1577_v55 = vadd.f32 %v1235_v8, %v766_v54 }
 0x16c   : > { %v670_v56 = vpop.f32.mrf.mxu1 }
 0x16d   : > { %v768_v58 = vadd.f32 %v767_v51, %v670_v56 }
 0x16f   : > { %v1579_v59 = vadd.f32 %v1235_v8, %v768_v58 }
 0x170   : > { %v698_v60 = vpop.f32.mrf.mxu3 }
 0x174   : > { %v673_v61 = vpop.f32.mrf.mxu1 }
 0x175   : > { %v771_v62 = vadd.f32 %v770_v52, %v673_v61 }
 0x177   : > { %v1581_v0 = vadd.f32 %v1235_v8, %v771_v62 }
 0x178   : > { %v700_v1 = vpop.f32.mrf.mxu3 }
 0x17c   : > { %v675_v2 = vpop.f32.mrf.mxu1 }
 0x17d   : > { %v773_v3 = vadd.f32 %v772_v57, %v675_v2 }
 0x17f   : > { %v1583_v4 = vadd.f32 %v1235_v8, %v773_v3 }
 0x180   : > { %v703_v5 = vpop.f32.mrf.mxu3 }
 0x184   : > { %v678_v7 = vpop.f32.mrf.mxu1 }
 0x185   : > { %v776_v9 = vadd.f32 %v775_v63, %v678_v7 }
 0x187   : > { %v1585_v10 = vadd.f32 %v1235_v8, %v776_v9 }
 0x188   : > { %v705_v12 = vpop.f32.mrf.mxu3 }
 0x18c   : > { %v680_v15 = vpop.f32.mrf.mxu1 }
 0x18d   : > { %v778_v18 = vadd.f32 %v777_v6, %v680_v15 }
 0x18f   : > { %v1587_v19 = vadd.f32 %v1235_v8, %v778_v18 }
 0x190   : > { %v795_v20 = vpop.f32.mrf.mxu3 }
 0x191   : > { %v796_v21 = vadd.f32 %v795_v20, %v698_v60 }
 0x193   : > { %v1589_v17 = vadd.f32 %v1235_v8, %v796_v21 }
 0x194   : > { %v683_v22 = vpop.f32.mrf.mxu1 }
 0x195   : > { %v781_v24 = vadd.f32 %v780_v14, %v683_v22 }
 0x197   : > { %v1591_v25 = vadd.f32 %v1235_v8, %v781_v24 }
 0x198   : > { %v797_v26 = vpop.f32.mrf.mxu3 }
 0x199   : > { %v798_v27 = vadd.f32 %v797_v26, %v700_v1 }
 0x19b   : > { %v1593_v28 = vadd.f32 %v1235_v8, %v798_v27 }
 0x19c   : > { %v685_v29 = vpop.f32.mrf.mxu1 }
 0x19d   : > { %v783_v30 = vadd.f32 %v782_v23, %v685_v29 }
 0x19f   : > { %v1595_v32 = vadd.f32 %v1235_v8, %v783_v30 }
 0x1a0   : > { %v800_v16 = vpop.f32.mrf.mxu3 }
 0x1a1   : > { %v801_v33 = vadd.f32 %v800_v16, %v703_v5 }
 0x1a3   : > { %v1597_v34 = vadd.f32 %v1235_v8, %v801_v33 }
 0x1a4   : > { %v688_v35 = vpop.f32.mrf.mxu1 }
 0x1a5   : > { %v786_v36 = vadd.f32 %v785_v31, %v688_v35 }
 0x1a7   : > { %v817_v37 = vadd.f32 %v1235_v8, %v786_v36 }
 0x1a8   : > { %v802_v39 = vpop.f32.mrf.mxu3 }
 0x1a9   : > { %v803_v40 = vadd.f32 %v802_v39, %v705_v12 }
 0x1ab   : > { %v1599_v41 = vadd.f32 %v1235_v8, %v803_v40 }
 0x1ac   : > { %v690_v42 = vpop.f32.mrf.mxu1 }
 0x1ad   : > { %v788_v13 = vadd.f32 %v787_v38, %v690_v42 }
 0x1af   : > { %v818_v43 = vadd.f32 %v1235_v8, %v788_v13 }
 0x1b4   : > { %v693_v11 = vpop.f32.mrf.mxu1 }
 0x1b5   : > { %v791_v45 = vadd.f32 %v790_v44, %v693_v11 }
 0x1b7   : > { %v819_v46 = vadd.f32 %v1235_v8, %v791_v45 }
 0x1bb   : > { %828 = sbr.rel (%p1082_p7) target bundleno = 460 (0x1cc), region = 52 }
 0x1bc   : > { %v695_v48 = vpop.f32.mrf.mxu1 }
 0x1bd   : > { %v793_v49 = vadd.f32 %v792_v47, %v695_v48 }
 0x1bf   : > { %v820_v50 = vadd.f32 %v1235_v8, %v793_v49 }
 0x1c0   : > { %v829_v51 = vmax.f32 %v1577_v55, 0.0  ;;  %v830_v52 = vmax.f32 %v1579_v59, 0.0  ;;  %v831_v53 = vmax.f32 %v1581_v0, 0.0  ;;  %v832_v54 = vmax.f32 %v1583_v4, 0.0 }
 0x1c1   : > { %v833_v56 = vmax.f32 %v1585_v10, 0.0  ;;  %v834_v57 = vmax.f32 %v1587_v19, 0.0  ;;  %v835_v58 = vmax.f32 %v1591_v25, 0.0  ;;  %v836_v60 = vmax.f32 %v1595_v32, 0.0 }
 0x1c2   : > { %v1122_v8 = vpack.c.bf16 %v830_v52, %v829_v51  ;;  %v1127_v61 = vpack.c.bf16 %v832_v54, %v831_v53  ;;  %v837_v62 = vmax.f32 %v817_v37, 0.0  ;;  %v838_v63 = vmax.f32 %v818_v43, 0.0 }
 0x1c3   : > { %v1132_v1 = vpack.c.bf16 %v834_v57, %v833_v56  ;;  %v1137_v2 = vpack.c.bf16 %v836_v60, %v835_v58  ;;  %v839_v3 = vmax.f32 %v819_v46, 0.0  ;;  %v840_v5 = vmax.f32 %v820_v50, 0.0 }
 0x1c4   : > { %1123 = vst [vmem:[#allocation2] sm:$0xff] %v1122_v8   ;;  %v1142_v6 = vpack.c.bf16 %v838_v63, %v837_v62  ;;  %v841_v7 = vmax.f32 %v1589_v17, 0.0  ;;  %v842_v9 = vmax.f32 %v1593_v28, 0.0  ;;  %v843_v12 = vmax.f32 %v1597_v34, 0.0 }
 0x1c5   : > { %1159 = vst [vmem:[#allocation2 + $0x8] sm:$0xff] %v1127_v61   ;;  %v1147_v14 = vpack.c.bf16 %v840_v5, %v839_v3  ;;  %v844_v15 = vmax.f32 %v1599_v41, 0.0 }
 0x1c6   : > { %1160 = vst [vmem:[#allocation2 + $0x10] sm:$0xff] %v1132_v1   ;;  %v1152_v18 = vpack.c.bf16 %v842_v9, %v841_v7 }
 0x1c7   : > { %1161 = vst [vmem:[#allocation2 + $0x18] sm:$0xff] %v1137_v2   ;;  %v1157_v20 = vpack.c.bf16 %v844_v15, %v843_v12 }
 0x1c8   : > { %1162 = vst [vmem:[#allocation2 + $0x20] sm:$0xff] %v1142_v6  }
 0x1c9   : > { %1163 = vst [vmem:[#allocation2 + $0x28] sm:$0xff] %v1147_v14  }
 0x1ca   : > { %1164 = vst [vmem:[#allocation2 + $0x30] sm:$0xff] %v1152_v18  }
 0x1cb   : > { %1165 = vst [vmem:[#allocation2 + $0x38] sm:$0xff] %v1157_v20  }
 0x1cc PF: > { %p1083_p9 = scmp.ne.s32.totalorder %s1354_s22, 2 }
 0x1ce   : > { %880 = sbr.rel (%p1083_p9) target bundleno = 483 (0x1e3), region = 56 }
 0x1d3   : > { %881 = vst [vmem:[%s1693_s5] sm:$0xff] %v1577_v55 }
 0x1d4   : > { %882 = vst [vmem:[%s1693_s5 + $0x8] sm:$0xff] %v1579_v59 }
 0x1d5   : > { %883 = vst [vmem:[%s1693_s5 + $0x10] sm:$0xff] %v1581_v0 }
 0x1d6   : > { %884 = vst [vmem:[%s1693_s5 + $0x18] sm:$0xff] %v1583_v4 }
 0x1d7   : > { %885 = vst [vmem:[%s1693_s5 + $0x20] sm:$0xff] %v1585_v10 }
 0x1d8   : > { %886 = vst [vmem:[%s1693_s5 + $0x28] sm:$0xff] %v1587_v19 }
 0x1d9   : > { %887 = vst [vmem:[%s1693_s5 + $0x30] sm:$0xff] %v1591_v25 }
 0x1da   : > { %888 = vst [vmem:[%s1693_s5 + $0x38] sm:$0xff] %v1595_v32 }
 0x1db   : > { %889 = vst [vmem:[%s1693_s5 + $0x40] sm:$0xff] %v817_v37 }
 0x1dc   : > { %890 = vst [vmem:[%s1693_s5 + $0x48] sm:$0xff] %v818_v43 }
 0x1dd   : > { %891 = vst [vmem:[%s1693_s5 + $0x50] sm:$0xff] %v819_v46 }
 0x1de   : > { %892 = vst [vmem:[%s1693_s5 + $0x58] sm:$0xff] %v820_v50 }
 0x1df   : > { %893 = vst [vmem:[%s1693_s5 + $0x60] sm:$0xff] %v1589_v17 }
 0x1e0   : > { %894 = vst [vmem:[%s1693_s5 + $0x68] sm:$0xff] %v1593_v28 }
 0x1e1   : > { %895 = vst [vmem:[%s1693_s5 + $0x70] sm:$0xff] %v1597_v34 }
 0x1e2   : > { %896 = vst [vmem:[%s1693_s5 + $0x78] sm:$0xff] %v1599_v41 }
 0x1e3 PF: > { %p15_p10 = scmp.ge.s32.totalorder %s1357_s23, 5   ;;  %s1697_s18 = smov %s1292_s19 }
 0x1e4   : > { %s1698_s19 = smov %s1296_s20  ;;  %s1699_s20 = smov %s1367_s26 }
 0x1e5   : > { %s1700_s21 = smov %s1357_s23  ;;  %17 = sbr.rel (!%p15_p10) target bundleno = 3 (0x3), region = 91 }
 0x1ea   :  { %908 = vsyncpa [#allocation4], 1 }
 0x1eb   :  { %910 = vsyncpa [#allocation4 + $0x1], 1 }

</bundles_post_ra>
